<compile_context>
chip_gen: v7x
topology: tpu7x:2x2x1
jax: 0.10.0
libtpu: 0.0.40
codegen_flags: <defaults>
</compile_context>

<pallas_src>
import functools

import jax
import jax.numpy as jnp
from jax import lax
from jax.experimental import pallas as pl
from jax.experimental.pallas import tpu as pltpu


def _center_loss_kernel(num_valid, labels_ref, x_ref, c_ref, out_ref, gath_ref):
    # labels_ref: (B_pad,) int32 in SMEM (scalar prefetch)
    # x_ref:      (TB, D)   x tile in VMEM (auto double-buffered)
    # c_ref:      (C, D)    full centers table, VMEM-resident
    # out_ref:    (1, 1, 128) lane-dense per-block partial sum
    # gath_ref:   (TB, D)   VMEM scratch for the gathered center rows
    i = pl.program_id(0)
    tb, d = gath_ref.shape

    # Gather the TB center rows this tile needs.  Labels live in SMEM and the
    # centers table in VMEM, so this is pure on-chip traffic (no HBM DMAs).
    @pl.loop(0, tb)
    def _gather(r):
        lbl = labels_ref[i * tb + r]
        gath_ref[pl.ds(r, 1), :] = c_ref[pl.ds(lbl, 1), :]

    # Dense (TB, D) elementwise work on the VPU (upcast in-kernel for bf16 inputs).
    diff = x_ref[...].astype(jnp.float32) - gath_ref[...].astype(jnp.float32)
    sq = diff * diff

    if num_valid is not None:  # batch was padded -> mask the padded rows
        rows = i * tb + lax.broadcasted_iota(jnp.int32, (tb, d), 0)
        sq = jnp.where(rows < num_valid, sq, 0.0)

    partial = jnp.sum(sq)  # single cross-lane (XLU) reduction per tile
    # Lane-dense (1, 1, 128) write -> unmasked vst; wrapper sums lane 0 per block.
    out_ref[...] = jnp.full(out_ref.shape, partial, dtype=out_ref.dtype)


def center_loss(x, labels, centers, lambda_c=0.5, *, block_rows=None,
                force_pallas=False):
    """Pallas CenterLoss forward.

    x:       (B, D) float
    labels:  (B,)   int
    centers: (C, D) float
    returns: scalar f32  lambda_c * 0.5 * sum((x - centers[labels])^2) / B
    """
    x = jnp.asarray(x)
    centers = jnp.asarray(centers)
    B, D = x.shape
    C, Dc = centers.shape
    assert D == Dc, (D, Dc)

    if B == 0:
        # Reference would divide by zero; define the empty-batch loss as 0.
        return jnp.zeros((), jnp.float32)

    # PyTorch index_select would raise on OOB labels; we clamp instead.
    labels = jnp.clip(jnp.asarray(labels).astype(jnp.int32), 0, C - 1)
    scale = float(lambda_c) * 0.5 / float(B)

    def ref_impl():
        xf = x.astype(jnp.float32)
        cf = centers.astype(jnp.float32)
        return scale * jnp.sum((xf - cf[labels]) ** 2)

    xsize = x.dtype.itemsize
    csize = centers.dtype.itemsize
    cbytes = C * D * csize

    # Tiny problems: launch + grid overhead exceeds the useful work -> pure JAX.
    if not force_pallas and (B * D * xsize + cbytes) < (512 * 1024):
        return ref_impl()

    # --- tile size / VMEM budgeting (v7x has only 64 MiB of VMEM) ----------
    VMEM_BUDGET = 48 << 20  # leave headroom below v7x's 64 MiB

    def working_set(tb):
        # 2x centers (double-buffer worst case) + 2x x tile + gather scratch
        return 2 * cbytes + 2 * tb * D * xsize + tb * D * csize

    if block_rows is None:
        tb = (2 << 20) // max(D * xsize, 1)        # ~2 MiB x tile per step
    else:
        tb = int(block_rows)
    tb = max(8, min(1024, (tb // 8) * 8))
    tb = min(tb, ((B + 7) // 8) * 8)
    while tb > 8 and working_set(tb) > VMEM_BUDGET:
        tb = max(8, ((tb // 2) // 8) * 8)
    if working_set(tb) > VMEM_BUDGET:
        # TODO(synk): very large centers tables that don't fit the VMEM budget
        # should keep centers in HBM (pl.ANY) with manual double-buffered
        # make_async_copy row-gather DMAs instead of this pure-JAX fallback.
        return ref_impl()

    b_pad = ((B + tb - 1) // tb) * tb
    n_blocks = b_pad // tb
    if b_pad != B:
        x = jnp.pad(x, ((0, b_pad - B), (0, 0)))
        labels = jnp.pad(labels, (0, b_pad - B))
    num_valid = B if b_pad != B else None

    vmem_limit = int(min(max(working_set(tb) + (2 << 20), 16 << 20), 64 << 20))

    grid_spec = pltpu.PrefetchScalarGridSpec(
        num_scalar_prefetch=1,  # labels -> SMEM, visible to kernel + index_maps
        grid=(n_blocks,),
        in_specs=[
            # one (TB, D) x tile per grid step (auto double-buffered)
            pl.BlockSpec((tb, D), lambda i, lbl: (i, 0)),
            # whole centers table, VMEM-resident (constant index_map -> one DMA)
            pl.BlockSpec((C, D), lambda i, lbl: (0, 0)),
        ],
        # lane-dense per-block partials: no cross-step carry -> parallel axis
        out_specs=pl.BlockSpec((1, 1, 128), lambda i, lbl: (i, 0, 0)),
        scratch_shapes=[pltpu.VMEM((tb, D), centers.dtype)],
    )

    partials = pl.pallas_call(
        functools.partial(_center_loss_kernel, num_valid),
        out_shape=jax.ShapeDtypeStruct((n_blocks, 1, 128), jnp.float32),
        grid_spec=grid_spec,
        compiler_params=pltpu.CompilerParams(
            dimension_semantics=("parallel",),  # v7x dual-TC can split the grid
            vmem_limit_bytes=vmem_limit,
        ),
    )(labels, x, centers)

    return scale * jnp.sum(partials[:, 0, 0])


if __name__ == "__main__":
    key = jax.random.PRNGKey(0)
    lambda_c = 0.5
    k1, k2, k3, k4, k5, k6 = jax.random.split(key, 6)

    # -- case 1: tiny shapes, single tile ------------------------------------
    B, D, C = 8, 32, 10
    x = jax.random.normal(k1, (B, D), dtype=jnp.float32)
    labels = jax.random.randint(k2, (B,), 0, C, dtype=jnp.int32)
    bound = (6.0 / (C + D)) ** 0.5  # deterministic xavier_uniform-style init
    centers = jax.random.uniform(k3, (C, D), jnp.float32, -bound, bound)

    loss = center_loss(x, labels, centers, lambda_c, force_pallas=True)
    jax.block_until_ready(loss)
    ref = lambda_c * 0.5 * jnp.sum((x - centers[labels]) ** 2) / B
    assert jnp.allclose(loss, ref, rtol=1e-5, atol=1e-5), (loss, ref)

    # -- case 2: multiple tiles + batch padding/masking (still small) --------
    B2, D2, C2 = 20, 32, 10
    x2 = jax.random.normal(k4, (B2, D2), dtype=jnp.float32)
    labels2 = jax.random.randint(k5, (B2,), 0, C2, dtype=jnp.int32)
    bound2 = (6.0 / (C2 + D2)) ** 0.5
    centers2 = jax.random.uniform(k6, (C2, D2), jnp.float32, -bound2, bound2)

    loss2 = center_loss(x2, labels2, centers2, lambda_c,
                        block_rows=8, force_pallas=True)
    jax.block_until_ready(loss2)
    ref2 = lambda_c * 0.5 * jnp.sum((x2 - centers2[labels2]) ** 2) / B2
    assert jnp.allclose(loss2, ref2, rtol=1e-5, atol=1e-5), (loss2, ref2)

    print("KERNEL_OK")
</pallas_src>

<mosaic_0001>
module attributes {stable_mosaic.version = 11 : i64} {
  func.func @_center_loss_kernel(%arg0: i32, %arg1: memref<8xi32, #tpu.memory_space<smem>>, %arg2: memref<8x32xf32, #tpu.memory_space<vmem>>, %arg3: memref<10x32xf32, #tpu.memory_space<vmem>>, %arg4: memref<1x1x128xf32, #tpu.memory_space<vmem>>, %arg5: memref<8x32xf32, #tpu.memory_space<vmem>>) attributes {dimension_semantics = [#tpu.dimension_semantics<parallel>], iteration_bounds = array<i64: 1>, scalar_prefetch = 1 : i64, scratch_operands = 1 : i64, tpu.core_type = #tpu.core_type<tc>, window_params = [{transform_indices = @transform_0, window_bounds = array<i64: 8, 32>}, {pipeline_mode = #tpu.pipeline_mode<synchronous>, transform_indices = @transform_1, window_bounds = array<i64: 10, 32>}, {transform_indices = @transform_2, window_bounds = array<i64: 1, 1, 128>}]} {
    %c0_i32 = arith.constant 0 : i32
    %c8_i32 = arith.constant 8 : i32
    %0 = arith.addi %c0_i32, %c8_i32 : i32
    %c1_i32 = arith.constant 1 : i32
    scf.for %arg6 = %c0_i32 to %0 step %c1_i32  : i32 {
      %c1_i32_7 = arith.constant 1 : i32
      %11 = arith.muli %arg6, %c1_i32_7 : i32
      %c0_i32_8 = arith.constant 0 : i32
      %12 = arith.addi %c0_i32_8, %11 : i32
      %c8_i32_9 = arith.constant 8 : i32
      %13 = arith.muli %arg0, %c8_i32_9 : i32
      %14 = arith.addi %13, %12 : i32
      %15 = arith.index_cast %14 : i32 to index
      %16 = memref.load %arg1[%15] : memref<8xi32, #tpu.memory_space<smem>>
      %17 = arith.index_cast %16 : i32 to index
      %c0_10 = arith.constant 0 : index
      %18 = vector.load %arg3[%17, %c0_10] : memref<10x32xf32, #tpu.memory_space<vmem>>, vector<1x32xf32>
      %19 = arith.index_cast %12 : i32 to index
      %c0_11 = arith.constant 0 : index
      %20 = vector.load %arg5[%19, %c0_11] : memref<8x32xf32, #tpu.memory_space<vmem>>, vector<1x32xf32>
      tpu.vector_store %arg5[%19, %c0_11], %18 {strides = array<i32>} : memref<8x32xf32, #tpu.memory_space<vmem>>, vector<1x32xf32>,
    }
    %c8_i32_0 = arith.constant 8 : i32
    %c0 = arith.constant 0 : index
    %c0_1 = arith.constant 0 : index
    %1 = vector.load %arg2[%c0, %c0_1] : memref<8x32xf32, #tpu.memory_space<vmem>>, vector<8x32xf32>
    %c0_2 = arith.constant 0 : index
    %c0_3 = arith.constant 0 : index
    %2 = vector.load %arg5[%c0_2, %c0_3] : memref<8x32xf32, #tpu.memory_space<vmem>>, vector<8x32xf32>
    %3 = arith.subf %1, %2 : vector<8x32xf32>
    %4 = arith.mulf %3, %3 : vector<8x32xf32>
    %5 = vector.shape_cast %4 : vector<8x32xf32> to vector<1x8x32xf32>
    %cst = arith.constant dense<0.000000e+00> : vector<1xf32>
    %6 = vector.multi_reduction <add>, %5, %cst [1, 2] : vector<1x8x32xf32> to vector<1xf32>
    %7 = vector.shape_cast %6 : vector<1xf32> to vector<1x1x1xf32>
    %8 = vector.extract %7[0, 0, 0] : f32 from vector<1x1x1xf32>
    %9 = vector.broadcast %8 : f32 to vector<1x1x128xf32>
    %c0_4 = arith.constant 0 : index
    %c0_5 = arith.constant 0 : index
    %c0_6 = arith.constant 0 : index
    %10 = vector.load %arg4[%c0_4, %c0_5, %c0_6] : memref<1x1x128xf32, #tpu.memory_space<vmem>>, vector<1x1x128xf32>
    tpu.vector_store %arg4[%c0_4, %c0_5, %c0_6], %9 {strides = array<i32>} : memref<1x1x128xf32, #tpu.memory_space<vmem>>, vector<1x1x128xf32>,
    return
  }
  func.func @transform_0(%arg0: i32, %arg1: memref<8xi32, #tpu.memory_space<smem>>) -> (i32, i32) {
    %c0_i32 = arith.constant 0 : i32
    %c0_i32_0 = arith.constant 0 : i32
    return %arg0, %c0_i32 : i32, i32
  }
  func.func @transform_1(%arg0: i32, %arg1: memref<8xi32, #tpu.memory_space<smem>>) -> (i32, i32) {
    %c0_i32 = arith.constant 0 : i32
    %c0_i32_0 = arith.constant 0 : i32
    %c0_i32_1 = arith.constant 0 : i32
    return %c0_i32, %c0_i32_0 : i32, i32
  }
  func.func @transform_2(%arg0: i32, %arg1: memref<8xi32, #tpu.memory_space<smem>>) -> (i32, i32, i32) {
    %c0_i32 = arith.constant 0 : i32
    %c0_i32_0 = arith.constant 0 : i32
    %c0_i32_1 = arith.constant 0 : i32
    return %arg0, %c0_i32, %c0_i32_0 : i32, i32, i32
  }
}

</mosaic_0001>

<bundles_post_ra>
// kernel: tpu_custom_call.1
= control target key start
LH: loop header
LB: loop body
LE: loop exit
PB: predicated region body
PF: predicated region fallthrough
CT: control target
= control target key end

     0   :  { %s286_s0 = inlined_call_operand.hbm [shape: s32[8], index: 0, kind: input, shape index: {}]   ;;  %s287_s1 = inlined_call_operand.hbm [shape: f32[8,32], index: 1, kind: input, shape index: {}]   ;;  %s288_s2 = inlined_call_operand.hbm [shape: f32[10,32], index: 2, kind: input, shape index: {}]   ;;  %s289_s3 = inlined_call_operand.hbm [shape: f32[1,1,128], index: 3, kind: output, shape index: {}]  }
   0x1   :  { %s113_s14 = scalar_lea.hbm %s286_s0, 16 }
   0x2   :  { %p114_p0 = scmp.ne.s32.totalorder %s286_s0, %s113_s14  ;;  %p117_p1 = scmp.lt.u32.totalorder %s113_s14, %s286_s0 }
   0x4   :  { %p119_p2 = pnand %p117_p1, %p114_p0 }
   0x6   :  { %122 = shalt.err (!%p119_p2)  }
   0x7   :  { %s205_s19 = smov [#allocation4]  }
   0x8   :  { %9 = dma.hbm_to_smem %s286_s0, 16, %s205_s19, [#allocation3] }
   0x9   :  { %193 = dma.done.wait [#allocation3], 16 }
   0xa   :  { %194 = vsyncadd [#allocation3], 4294967280 }
   0xb   :  { %11 = sfence }
   0xc   :  { %12 = vsyncpa [#allocation6], 0 }
   0xd   :  { %13 = vsyncpa [#allocation9], 0 }
   0xe   :  { %14 = vsyncpa [#allocation7], 0  ;;  %s206_s22 = smov [#allocation5]   ;;  %s207_s24 = smov [#allocation8]  }
   0xf   :  { %s21_s23 = sshll.u32 %s206_s22, 4  ;;  %s30_s25 = sshll.u32 %s207_s24, 4  ;;  %s22_s23 = int_to_ptr.vmem [resolvable:$true] %s21_s23  ;;  %s243_s25 = int_to_ptr.vmem [resolvable:$true] %s30_s25 }
  0x10   :  { %s123_s28 = scalar_lea.hbm %s287_s1, 128 }
  0x11   :  { %p124_p3 = scmp.ne.s32.totalorder %s287_s1, %s123_s28  ;;  %p127_p4 = scmp.lt.u32.totalorder %s123_s28, %s287_s1 }
  0x13   :  { %p129_p5 = pnand %p127_p4, %p124_p3 }
  0x15   :  { %132 = shalt.err (!%p129_p5)
}
  0x16   :  { %s133_s5 = scalar_lea.vmem %s22_s23, 128  ;;  %p138_p7 = scmp.lt.s32.totalorder %s22_s23, %s22_s23 }
  0x17   :  { %p134_p6 = scmp.ne.s32.totalorder %s22_s23, %s133_s5  ;;  %p139_p8 = scmp.lt.s32.totalorder %s133_s5, %s133_s5 }
  0x19   :  { %p140_p9 = por %p139_p8, %p138_p7 }
  0x1b   :  { %p141_p10 = pnand %p140_p9, %p134_p6 }
  0x1d   :  { %144 = shalt.err (!%p141_p10)
}
  0x1e   :  { %24 = dma.hbm_to_vmem [thread:$0]  %s287_s1, 128, %s22_s23, [#allocation6]  }
  0x1f   :  { %s145_s10 = scalar_lea.hbm %s288_s2, 256 }
  0x20   :  { %p146_p11 = scmp.ne.s32.totalorder %s288_s2, %s145_s10  ;;  %p149_p12 = scmp.lt.u32.totalorder %s145_s10, %s288_s2 }
  0x22   :  { %p151_p13 = pnand %p149_p12, %p146_p11 }
  0x24   :  { %154 = shalt.err (!%p151_p13)
}
  0x25   :  { %s155_s15 = scalar_lea.vmem %s243_s25, 256  ;;  %p160_p1 = scmp.lt.s32.totalorder %s243_s25, %s243_s25 }
  0x26   :  { %p156_p0 = scmp.ne.s32.totalorder %s243_s25, %s155_s15  ;;  %p161_p2 = scmp.lt.s32.totalorder %s155_s15, %s155_s15 }
  0x28   :  { %p162_p3 = por %p161_p2, %p160_p1 }
  0x2a   :  { %p163_p4 = pnand %p162_p3, %p156_p0 }
  0x2c   :  { %166 = shalt.err (!%p163_p4)
}
  0x2d   :  { %s208_s1 = smov 128   ;;  %s209_s16 = smov 8  }
  0x2e   :  { %36 = dma.hbm_to_vmem [thread:$0]  %s288_s2, 256, %s243_s25, [#allocation9], %s208_s1, %s208_s1, %s209_s16  }
  0x2f   :  { %195 = dma.done.wait [#allocation6], 128  }
  0x30   :  { %196 = vsyncadd [#allocation6], 4294967168 }
  0x31   :  { %197 = dma.done.wait [#allocation9], 256  }
  0x32   :  { %198 = vsyncadd [#allocation9], 4294967040  ;;  %s201_s19 = smov 0  }
  0x33 LB: > { %s51_s20 = sld [smem:[#allocation4 + %s203_s19]]  ;;  %vm55_vm0 = vcmask 253952   ;;  %s54_s22 = scalar_lea.vmem [#allocation2], %s203_s19  ;;  %s203_s19 = sphi %s201_s19, %s48_s19  }
  0x34   : > { %s48_s19 = sadd.s32 1, %s203_s19  }
  0x35   : > { %p45_p5 = scmp.ge.s32.totalorder %s48_s19, 8  }
  0x36   :  { %v57_v1 = vld [vmem:[#allocation5] sm:$0xff] (%p45_p5)  ;;  %vm61_vm1 = vcmask (%p45_p5), 261120   ;;  %s210_s2 = smov (%p45_p5), [#allocation10]  }
  0x37   :  { %47 = sbr.rel (!%p45_p5) target bundleno = 51 (0x33), region = 45  ;;  %s80_s23 = sshll.u32 (%p45_p5), %s210_s2, 4  ;;  %s81_s23 = int_to_ptr.vmem [resolvable:$true] %s80_s23 }
  0x38   :  { %s167_s25 = scalar_lea.vmem (%p45_p5), %s81_s23, 16  ;;  %s171_s26 = scalar_lea.vmem (%p45_p5), %s81_s23, 32 }
  0x39   : > { %s52_s21 = scalar_lea.vmem [#allocation8], %s51_s20  ;;  %p168_p6 = scmp.ne.s32.totalorder (%p45_p5), %s81_s23, %s167_s25 }
  0x3a   : > { %v53_v0 = vld [vmem:[%s52_s21] sm:$0x1]  ;;  %p172_p7 = scmp.lt.s32.totalorder (%p45_p5), %s81_s23, %s81_s23  ;;  %p173_p8 = scmp.lt.s32.totalorder (%p45_p5), %s171_s26, %s167_s25 }
  0x3b   : > { %56 = vst.msk [vmem:[%s54_s22] sm:$0x1] %vm55_vm0, %v53_v0 }
  0x3c   :  { %p174_p9 = por (%p45_p5), %p173_p8, %p172_p7 }
  0x3e   :  { %p175_p10 = pnand %p174_p9, %p168_p6 }
  0x42   :  { %v58_v2 = vld [vmem:[#allocation2] sm:$0xff] }
  0x43   :  { %v59_v3 = vsub.f32 %v57_v1, %v58_v2 }
  0x45   :  { %v60_v4 = vmul.f32 %v59_v3, %v59_v3 }
  0x47   :  { %v62_v5 = vsel %vm61_vm1, %v60_v4, 0.0 }
  0x48   :  { %63 = vadd.xlane.f32.xlu0 %v62_v5 }
  0xd5   :  { %v64_v6 = vpop.xlane.xlu0 %63 }
  0xd6   :  { %v65_v7 = vrot.slane %v64_v6, 4 }
  0xd8   :  { %v66_v8 = vadd.f32 %v65_v7, %v64_v6 }
  0xda   :  { %v67_v9 = vrot.slane %v66_v8, 2 }
  0xdc   :  { %v68_v10 = vadd.f32 %v67_v9, %v66_v8 }
  0xde   :  { %v69_v11 = vrot.slane %v68_v10, 1 }
  0xe0   :  { %v70_v12 = vadd.f32 %v69_v11, %v68_v10 }
  0xe2   :  { %97 = vpush %v70_v12 }
 0x113   :  { %s98_s24 = spop %97 }
 0x114   :  { %v72_v13 = vstv %s98_s24 }
 0x115   :  { %73 = vst [vmem:[#allocation10] sm:$0x1] %v72_v13 }
 0x116   :  { %178 = shalt.err (!%p175_p10)
}
 0x117   :  { %s179_s29 = scalar_lea.hbm %s289_s3, 16 }
 0x118   :  { %p180_p11 = scmp.ne.s32.totalorder %s289_s3, %s179_s29  ;;  %p183_p12 = scmp.lt.u32.totalorder %s179_s29, %s289_s3 }
 0x11a   :  { %p185_p13 = pnand %p183_p12, %p180_p11 }
 0x11c   :  { %188 = shalt.err (!%p185_p13)
}
 0x11d   :  { %83 = dma.vmem_to_hbm [thread:$0]  %s81_s23, 16, %s289_s3, [#allocation7]  }
 0x11e   :  { %199 = dma.done.wait [#allocation7], 16  }
 0x11f   :  { %200 = vsyncadd [#allocation7], 4294967280 }
 0x120   :  { %87 = vsyncpa [#allocation6], 1 }
 0x121   :  { %88 = vsyncpa [#allocation9], 1 }
 0x122   :  { %89 = vsyncpa [#allocation7], 1 }

</bundles_post_ra>
